<compile_context>
chip_gen: v7x
topology: tpu7x:2x2x1
jax: 0.10.0
libtpu: 0.0.40
codegen_flags: <defaults>
</compile_context>

<pallas_src>
import functools

import jax
import jax.numpy as jnp
from jax.experimental import pallas as pl
from jax.experimental.pallas import tpu as pltpu

_LANE = 128


def _round_up(x: int, m: int) -> int:
    return ((x + m - 1) // m) * m


def _fused_mlp_kernel(*refs, n_blocks: int):
    """Fused MLP on one batch tile.

    refs = (x, w0, b0, ..., w_{n-1}, b_{n-1}, w_head, b_head,
            blocks_out, head_out)
    x:      (tm, d_in_p)        w_i: (d_prev_p, d_next_p)   b_i: (1, d_next_p)
    blocks_out: (tm, d_block_p) head_out: (tm, d_out_p)
    """
    x_ref = refs[0]
    blocks_out_ref = refs[-2]
    head_out_ref = refs[-1]
    compute_dtype = x_ref.dtype

    h = x_ref[...]
    for i in range(n_blocks):
        w_ref = refs[1 + 2 * i]
        b_ref = refs[2 + 2 * i]
        # MXU matmul in the input dtype, f32 accumulator; bias + ReLU in f32.
        y = jnp.dot(h, w_ref[...], preferred_element_type=jnp.float32)
        y = y + b_ref[...].astype(jnp.float32)
        y = jnp.maximum(y, 0.0)
        # Dropout: identity at inference.
        h = y.astype(compute_dtype)
    blocks_out_ref[...] = h.astype(blocks_out_ref.dtype)

    wh_ref = refs[1 + 2 * n_blocks]
    bh_ref = refs[2 + 2 * n_blocks]
    yh = jnp.dot(h, wh_ref[...], preferred_element_type=jnp.float32)
    yh = yh + bh_ref[...].astype(jnp.float32)
    head_out_ref[...] = yh.astype(head_out_ref.dtype)


def mlp_forward(params, x, *, tm_max: int = 512):
    """Matches MLP.forward: returns (head(x_blocks), x_blocks)."""
    B, d_in = x.shape
    blocks = params["blocks"]
    w_head, b_head = params["head"]
    n_blocks = len(blocks)
    d_block = blocks[0][0].shape[1]
    d_out = w_head.shape[1]
    itemsize = jnp.dtype(x.dtype).itemsize

    # Lane-dense padded feature dims; sublane-aligned batch tile.
    sub = 16 if itemsize == 2 else 8
    d_in_p = _round_up(d_in, _LANE)
    d_block_p = _round_up(d_block, _LANE)
    d_out_p = _round_up(d_out, _LANE)
    tm = min(_round_up(B, sub), _round_up(tm_max, sub))
    B_p = _round_up(B, tm)

    # Zero-pad activations / weights / biases (exact: padded channels are 0).
    xp = jnp.zeros((B_p, d_in_p), x.dtype).at[:B, :d_in].set(x)
    padded_params = []
    d_prev, d_prev_p = d_in, d_in_p
    for (w_t, b) in blocks:
        wp = jnp.zeros((d_prev_p, d_block_p), w_t.dtype).at[:d_prev, :d_block].set(w_t)
        bp = jnp.zeros((1, d_block_p), b.dtype).at[0, :d_block].set(b)
        padded_params += [wp, bp]
        d_prev, d_prev_p = d_block, d_block_p
    whp = jnp.zeros((d_block_p, d_out_p), w_head.dtype).at[:d_block, :d_out].set(w_head)
    bhp = jnp.zeros((1, d_out_p), b_head.dtype).at[0, :d_out].set(b_head)
    padded_params += [whp, bhp]

    # BlockSpecs: batch-tiled x/outputs; weights/biases resident (block (0,0) for
    # every batch tile -> no re-DMA across grid steps).
    in_specs = [pl.BlockSpec((tm, d_in_p), lambda i: (i, 0))]
    d_prev_p = d_in_p
    for _ in range(n_blocks):
        in_specs.append(pl.BlockSpec((d_prev_p, d_block_p), lambda i: (0, 0)))
        in_specs.append(pl.BlockSpec((1, d_block_p), lambda i: (0, 0)))
        d_prev_p = d_block_p
    in_specs.append(pl.BlockSpec((d_block_p, d_out_p), lambda i: (0, 0)))
    in_specs.append(pl.BlockSpec((1, d_out_p), lambda i: (0, 0)))

    out_specs = (
        pl.BlockSpec((tm, d_block_p), lambda i: (i, 0)),
        pl.BlockSpec((tm, d_out_p), lambda i: (i, 0)),
    )
    out_shape = (
        jax.ShapeDtypeStruct((B_p, d_block_p), x.dtype),
        jax.ShapeDtypeStruct((B_p, d_out_p), x.dtype),
    )

    # Scheduler hint (FLOPs / bytes of the padded problem).
    flops = 2 * B_p * (
        d_in_p * d_block_p
        + (n_blocks - 1) * d_block_p * d_block_p
        + d_block_p * d_out_p
    )
    param_bytes = sum(a.size * jnp.dtype(a.dtype).itemsize for a in padded_params)
    bytes_accessed = (
        xp.size * itemsize
        + param_bytes
        + (B_p * d_block_p + B_p * d_out_p) * itemsize
    )
    cost = pl.CostEstimate(flops=flops, transcendentals=0,
                           bytes_accessed=bytes_accessed)

    # VMEM budget: double-buffered per-tile inputs/outputs + resident params,
    # plus headroom for in-kernel f32 intermediates; clamp to a safe ceiling.
    tile_io_bytes = 2 * (tm * d_in_p + tm * d_block_p + tm * d_out_p) * itemsize
    interm_bytes = 4 * tm * max(d_block_p, d_out_p) * 4  # f32 temporaries
    vmem_bytes = min(_round_up(param_bytes + tile_io_bytes + interm_bytes + (4 << 20),
                               1 << 20),
                     64 * 1024 * 1024)

    kernel = functools.partial(_fused_mlp_kernel, n_blocks=n_blocks)
    blocks_out, head_out = pl.pallas_call(
        kernel,
        out_shape=out_shape,
        grid_spec=pl.GridSpec(
            grid=(B_p // tm,),
            in_specs=in_specs,
            out_specs=out_specs,
        ),
        compiler_params=pltpu.CompilerParams(
            dimension_semantics=("parallel",),   # megacore batch sharding (v7x)
            vmem_limit_bytes=vmem_bytes,
        ),
        cost_estimate=cost,
    )(xp, *padded_params)

    x_blocks = blocks_out[:B, :d_block]
    x_new = head_out[:B, :d_out]
    return x_new, x_blocks


def init_mlp_params(key, *, d_in, d_out, n_blocks, d_block):
    """Deterministic params matching the PyTorch module's shapes.

    Each block: Linear(d_prev -> d_block) with bias; Head: Linear(d_block -> d_out).
    Weights stored already transposed as (d_prev, d_next) so y = x @ W + b.
    """
    params = {"blocks": [], "head": None}
    d_prev = d_in
    for _ in range(n_blocks):
        key, k_w, k_b = jax.random.split(key, 3)
        bound = 1.0 / (d_prev ** 0.5)
        w_t = jax.random.uniform(k_w, (d_prev, d_block), jnp.float32, -bound, bound)
        b = jax.random.uniform(k_b, (d_block,), jnp.float32, -bound, bound)
        params["blocks"].append((w_t, b))
        d_prev = d_block
    key, k_w, k_b = jax.random.split(key, 3)
    bound = 1.0 / (d_prev ** 0.5)
    w_t = jax.random.uniform(k_w, (d_prev, d_out), jnp.float32, -bound, bound)
    b = jax.random.uniform(k_b, (d_out,), jnp.float32, -bound, bound)
    params["head"] = (w_t, b)
    return params


if __name__ == "__main__":
    # Small shapes consistent with the module's forward: x is (batch, d_in).
    batch, d_in, d_block, n_blocks, d_out = 8, 16, 32, 2, 8

    key = jax.random.PRNGKey(0)
    key, kx = jax.random.split(key)
    x = jax.random.normal(kx, (batch, d_in), jnp.float32)

    params = init_mlp_params(key, d_in=d_in, d_out=d_out,
                             n_blocks=n_blocks, d_block=d_block)

    x_new, x_blocks = mlp_forward(params, x)
    jax.block_until_ready((x_new, x_blocks))

    # Reference check in plain JAX (same math, eval-mode dropout = identity).
    h_ref = x
    for (w_t, b) in params["blocks"]:
        h_ref = jnp.maximum(h_ref @ w_t + b, 0.0)
    xnew_ref = h_ref @ params["head"][0] + params["head"][1]

    assert x_new.shape == (batch, d_out) and x_blocks.shape == (batch, d_block)
    assert jnp.allclose(x_blocks, h_ref, atol=1e-4, rtol=1e-4), "block output mismatch"
    assert jnp.allclose(x_new, xnew_ref, atol=1e-4, rtol=1e-4), "head output mismatch"

    print("KERNEL_OK")
</pallas_src>

<mosaic_0001>
module attributes {stable_mosaic.version = 11 : i64} {
  func.func @_fused_mlp_kernel(%arg0: i32, %arg1: memref<8x128xf32, #tpu.memory_space<vmem>>, %arg2: memref<128x128xf32, #tpu.memory_space<vmem>>, %arg3: memref<1x128xf32, #tpu.memory_space<vmem>>, %arg4: memref<128x128xf32, #tpu.memory_space<vmem>>, %arg5: memref<1x128xf32, #tpu.memory_space<vmem>>, %arg6: memref<128x128xf32, #tpu.memory_space<vmem>>, %arg7: memref<1x128xf32, #tpu.memory_space<vmem>>, %arg8: memref<8x128xf32, #tpu.memory_space<vmem>>, %arg9: memref<8x128xf32, #tpu.memory_space<vmem>>) attributes {dimension_semantics = [#tpu.dimension_semantics<parallel>], iteration_bounds = array<i64: 1>, scalar_prefetch = 0 : i64, scratch_operands = 0 : i64, tpu.core_type = #tpu.core_type<tc>, window_params = [{transform_indices = @transform_0, window_bounds = array<i64: 8, 128>}, {pipeline_mode = #tpu.pipeline_mode<synchronous>, transform_indices = @transform_1, window_bounds = array<i64: 128, 128>}, {pipeline_mode = #tpu.pipeline_mode<synchronous>, transform_indices = @transform_2, window_bounds = array<i64: 1, 128>}, {pipeline_mode = #tpu.pipeline_mode<synchronous>, transform_indices = @transform_3, window_bounds = array<i64: 128, 128>}, {pipeline_mode = #tpu.pipeline_mode<synchronous>, transform_indices = @transform_4, window_bounds = array<i64: 1, 128>}, {pipeline_mode = #tpu.pipeline_mode<synchronous>, transform_indices = @transform_5, window_bounds = array<i64: 128, 128>}, {pipeline_mode = #tpu.pipeline_mode<synchronous>, transform_indices = @transform_6, window_bounds = array<i64: 1, 128>}, {transform_indices = @transform_7, window_bounds = array<i64: 8, 128>}, {transform_indices = @transform_8, window_bounds = array<i64: 8, 128>}]} {
    %c0 = arith.constant 0 : index
    %c0_0 = arith.constant 0 : index
    %0 = vector.load %arg1[%c0, %c0_0] : memref<8x128xf32, #tpu.memory_space<vmem>>, vector<8x128xf32>
    %c0_1 = arith.constant 0 : index
    %c0_2 = arith.constant 0 : index
    %1 = vector.load %arg2[%c0_1, %c0_2] : memref<128x128xf32, #tpu.memory_space<vmem>>, vector<128x128xf32>
    %cst = arith.constant dense<0.000000e+00> : vector<8x128xf32>
    %2 = tpu.matmul %0, %1, %cst {dimension_numbers = #tpu.dot_dimension_numbers<[1], [0], [0], [1], [0, 0, 1, 1], [], []>} : vector<8x128xf32>, vector<128x128xf32>, vector<8x128xf32> -> vector<8x128xf32>
    %c0_3 = arith.constant 0 : index
    %c0_4 = arith.constant 0 : index
    %3 = vector.load %arg3[%c0_3, %c0_4] : memref<1x128xf32, #tpu.memory_space<vmem>>, vector<1x128xf32>
    %4 = vector.broadcast %3 : vector<1x128xf32> to vector<8x128xf32>
    %5 = arith.addf %2, %4 : vector<8x128xf32>
    %cst_5 = arith.constant 0.000000e+00 : f32
    %6 = vector.broadcast %cst_5 : f32 to vector<8x128xf32>
    %7 = arith.maximumf %5, %6 : vector<8x128xf32>
    %c0_6 = arith.constant 0 : index
    %c0_7 = arith.constant 0 : index
    %8 = vector.load %arg4[%c0_6, %c0_7] : memref<128x128xf32, #tpu.memory_space<vmem>>, vector<128x128xf32>
    %cst_8 = arith.constant dense<0.000000e+00> : vector<8x128xf32>
    %9 = tpu.matmul %7, %8, %cst_8 {dimension_numbers = #tpu.dot_dimension_numbers<[1], [0], [0], [1], [0, 0, 1, 1], [], []>} : vector<8x128xf32>, vector<128x128xf32>, vector<8x128xf32> -> vector<8x128xf32>
    %c0_9 = arith.constant 0 : index
    %c0_10 = arith.constant 0 : index
    %10 = vector.load %arg5[%c0_9, %c0_10] : memref<1x128xf32, #tpu.memory_space<vmem>>, vector<1x128xf32>
    %11 = vector.broadcast %10 : vector<1x128xf32> to vector<8x128xf32>
    %12 = arith.addf %9, %11 : vector<8x128xf32>
    %cst_11 = arith.constant 0.000000e+00 : f32
    %13 = vector.broadcast %cst_11 : f32 to vector<8x128xf32>
    %14 = arith.maximumf %12, %13 : vector<8x128xf32>
    %c0_12 = arith.constant 0 : index
    %c0_13 = arith.constant 0 : index
    %15 = vector.load %arg8[%c0_12, %c0_13] : memref<8x128xf32, #tpu.memory_space<vmem>>, vector<8x128xf32>
    tpu.vector_store %arg8[%c0_12, %c0_13], %14 {strides = array<i32>} : memref<8x128xf32, #tpu.memory_space<vmem>>, vector<8x128xf32>,
    %c0_14 = arith.constant 0 : index
    %c0_15 = arith.constant 0 : index
    %16 = vector.load %arg6[%c0_14, %c0_15] : memref<128x128xf32, #tpu.memory_space<vmem>>, vector<128x128xf32>
    %cst_16 = arith.constant dense<0.000000e+00> : vector<8x128xf32>
    %17 = tpu.matmul %14, %16, %cst_16 {dimension_numbers = #tpu.dot_dimension_numbers<[1], [0], [0], [1], [0, 0, 1, 1], [], []>} : vector<8x128xf32>, vector<128x128xf32>, vector<8x128xf32> -> vector<8x128xf32>
    %c0_17 = arith.constant 0 : index
    %c0_18 = arith.constant 0 : index
    %18 = vector.load %arg7[%c0_17, %c0_18] : memref<1x128xf32, #tpu.memory_space<vmem>>, vector<1x128xf32>
    %19 = vector.broadcast %18 : vector<1x128xf32> to vector<8x128xf32>
    %20 = arith.addf %17, %19 : vector<8x128xf32>
    %c0_19 = arith.constant 0 : index
    %c0_20 = arith.constant 0 : index
    %21 = vector.load %arg9[%c0_19, %c0_20] : memref<8x128xf32, #tpu.memory_space<vmem>>, vector<8x128xf32>
    tpu.vector_store %arg9[%c0_19, %c0_20], %20 {strides = array<i32>} : memref<8x128xf32, #tpu.memory_space<vmem>>, vector<8x128xf32>,
    return
  }
  func.func @transform_0(%arg0: i32) -> (i32, i32) {
    %c0_i32 = arith.constant 0 : i32
    %c0_i32_0 = arith.constant 0 : i32
    return %arg0, %c0_i32 : i32, i32
  }
  func.func @transform_1(%arg0: i32) -> (i32, i32) {
    %c0_i32 = arith.constant 0 : i32
    %c0_i32_0 = arith.constant 0 : i32
    %c0_i32_1 = arith.constant 0 : i32
    return %c0_i32, %c0_i32_0 : i32, i32
  }
  func.func @transform_2(%arg0: i32) -> (i32, i32) {
    %c0_i32 = arith.constant 0 : i32
    %c0_i32_0 = arith.constant 0 : i32
    %c0_i32_1 = arith.constant 0 : i32
    return %c0_i32, %c0_i32_0 : i32, i32
  }
  func.func @transform_3(%arg0: i32) -> (i32, i32) {
    %c0_i32 = arith.constant 0 : i32
    %c0_i32_0 = arith.constant 0 : i32
    %c0_i32_1 = arith.constant 0 : i32
    return %c0_i32, %c0_i32_0 : i32, i32
  }
  func.func @transform_4(%arg0: i32) -> (i32, i32) {
    %c0_i32 = arith.constant 0 : i32
    %c0_i32_0 = arith.constant 0 : i32
    %c0_i32_1 = arith.constant 0 : i32
    return %c0_i32, %c0_i32_0 : i32, i32
  }
  func.func @transform_5(%arg0: i32) -> (i32, i32) {
    %c0_i32 = arith.constant 0 : i32
    %c0_i32_0 = arith.constant 0 : i32
    %c0_i32_1 = arith.constant 0 : i32
    return %c0_i32, %c0_i32_0 : i32, i32
  }
  func.func @transform_6(%arg0: i32) -> (i32, i32) {
    %c0_i32 = arith.constant 0 : i32
    %c0_i32_0 = arith.constant 0 : i32
    %c0_i32_1 = arith.constant 0 : i32
    return %c0_i32, %c0_i32_0 : i32, i32
  }
  func.func @transform_7(%arg0: i32) -> (i32, i32) {
    %c0_i32 = arith.constant 0 : i32
    %c0_i32_0 = arith.constant 0 : i32
    return %arg0, %c0_i32 : i32, i32
  }
  func.func @transform_8(%arg0: i32) -> (i32, i32) {
    %c0_i32 = arith.constant 0 : i32
    %c0_i32_0 = arith.constant 0 : i32
    return %arg0, %c0_i32 : i32, i32
  }
}

</mosaic_0001>

<bundles_post_ra>
// kernel: tpu_custom_call.1
= control target key start
LH: loop header
LB: loop body
LE: loop exit
PB: predicated region body
PF: predicated region fallthrough
CT: control target
= control target key end

     0   :  { %14 = vsyncpa [#allocation3], 0  ;;  %s958_s0 = inlined_call_operand.hbm [shape: f32[8,128], index: 0, kind: input, shape index: {}]   ;;  %s959_s1 = inlined_call_operand.hbm [shape: f32[128,128], index: 1, kind: input, shape index: {}]   ;;  %s960_s2 = inlined_call_operand.vmem [shape: f32[1,128], index: 2, kind: input, shape index: {}]   ;;  %s961_s3 = inlined_call_operand.hbm [shape: f32[128,128], index: 3, kind: input, shape index: {}]   ;;  %s962_s4 = inlined_call_operand.vmem [shape: f32[1,128], index: 4, kind: input, shape index: {}]   ;;  %s963_s5 = inlined_call_operand.hbm [shape: f32[128,128], index: 5, kind: input, shape index: {}]   ;;  %s964_s6 = inlined_call_operand.vmem [shape: f32[1,128], index: 6, kind: input, shape index: {}]   ;;  %s965_s7 = inlined_call_operand.hbm [shape: f32[8,128], index: 7, kind: output, shape index: {0}]   ;;  %s966_s8 = inlined_call_operand.hbm [shape: f32[8,128], index: 8, kind: output, shape index: {1}]  }
   0x1   :  { %15 = vsyncpa [#allocation6], 0 }
   0x2   :  { %16 = vsyncpa [#allocation9], 0 }
   0x3   :  { %17 = vsyncpa [#allocation4], 0 }
   0x4   :  { %18 = vsyncpa [#allocation12], 0  ;;  %s782_s27 = smov [#allocation5]   ;;  %s640_s9 = scalar_lea.hbm %s959_s1, 2048 }
   0x5   :  { %s34_s28 = sshll.u32 %s782_s27, 4  ;;  %p641_p0 = scmp.ne.s32.totalorder %s959_s1, %s640_s9  ;;  %s35_s28 = int_to_ptr.vmem [resolvable:$true] %s34_s28 }
   0x6   :  { %p644_p1 = scmp.lt.u32.totalorder %s640_s9, %s959_s1 }
   0x8   :  { %p646_p2 = pnand %p644_p1, %p641_p0 }
   0xa   :  { %649 = shalt.err (!%p646_p2)
}
   0xb   :  { %s650_s14 = scalar_lea.vmem %s35_s28, 2048  ;;  %p655_p4 = scmp.lt.s32.totalorder %s35_s28, %s35_s28 }
   0xc   :  { %p651_p3 = scmp.ne.s32.totalorder %s35_s28, %s650_s14  ;;  %p656_p5 = scmp.lt.s32.totalorder %s650_s14, %s650_s14 }
   0xe   :  { %p657_p6 = por %p656_p5, %p655_p4 }
  0x10   :  { %p658_p7 = pnand %p657_p6, %p651_p3 }
  0x12   :  { %661 = shalt.err (!%p658_p7)
}
  0x13   :  { %s783_s15 = smov 128   ;;  %s784_s16 = smov 8  }
  0x14   :  { %40 = dma.hbm_to_vmem [thread:$0]  %s959_s1, 2048, %s35_s28, [#allocation6], %s783_s15, %s783_s15, %s784_s16  }
  0x15   :  { %s785_s19 = smov [#allocation2]   ;;  %s786_s21 = smov [#allocation7]  }
  0x16   :  { %s25_s20 = sshll.u32 %s785_s19, 4  ;;  %s48_s22 = sshll.u32 %s786_s21, 4  ;;  %s26_s20 = int_to_ptr.vmem [resolvable:$true] %s25_s20  ;;  %s49_s22 = int_to_ptr.vmem [resolvable:$true] %s48_s22 }
  0x17   :  { %s662_s25 = scalar_lea.hbm %s958_s0, 128 }
  0x18   :  { %p663_p8 = scmp.ne.s32.totalorder %s958_s0, %s662_s25  ;;  %p666_p9 = scmp.lt.u32.totalorder %s662_s25, %s958_s0 }
  0x1a   :  { %p668_p10 = pnand %p666_p9, %p663_p8 }
  0x1c   :  { %671 = shalt.err (!%p668_p10)
}
  0x1d   :  { %s672_s1 = scalar_lea.vmem %s26_s20, 128  ;;  %p677_p12 = scmp.lt.s32.totalorder %s26_s20, %s26_s20 }
  0x1e   :  { %p673_p11 = scmp.ne.s32.totalorder %s26_s20, %s672_s1  ;;  %p678_p13 = scmp.lt.s32.totalorder %s672_s1, %s672_s1 }
  0x20   :  { %p679_p0 = por %p678_p13, %p677_p12 }
  0x22   :  { %p680_p1 = pnand %p679_p0, %p673_p11 }
  0x24   :  { %683 = shalt.err (!%p680_p1)
}
  0x25   :  { %28 = dma.hbm_to_vmem [thread:$0]  %s958_s0, 128, %s26_s20, [#allocation3]  }
  0x26   :  { %s684_s12 = scalar_lea.hbm %s961_s3, 2048 }
  0x27   :  { %p685_p2 = scmp.ne.s32.totalorder %s961_s3, %s684_s12  ;;  %p688_p3 = scmp.lt.u32.totalorder %s684_s12, %s961_s3 }
  0x29   :  { %p690_p4 = pnand %p688_p3, %p685_p2 }
  0x2b   :  { %693 = shalt.err (!%p690_p4)
}
  0x2c   :  { %s694_s19 = scalar_lea.vmem %s49_s22, 2048  ;;  %p699_p6 = scmp.lt.s32.totalorder %s49_s22, %s49_s22 }
  0x2d   :  { %p695_p5 = scmp.ne.s32.totalorder %s49_s22, %s694_s19  ;;  %p700_p7 = scmp.lt.s32.totalorder %s694_s19, %s694_s19 }
  0x2f   :  { %p701_p8 = por %p700_p7, %p699_p6 }
  0x31   :  { %p702_p9 = pnand %p701_p8, %p695_p5 }
  0x33   :  { %705 = shalt.err (!%p702_p9)
}
  0x34   :  { %54 = dma.hbm_to_vmem [thread:$0]  %s961_s3, 2048, %s49_s22, [#allocation6], %s783_s15, %s783_s15, %s784_s16  }
  0x35   :  { %s787_s21 = smov [#allocation8]   ;;  %s706_s26 = scalar_lea.hbm %s963_s5, 2048 }
  0x36   :  { %s62_s23 = sshll.u32 %s787_s21, 4  ;;  %p707_p10 = scmp.ne.s32.totalorder %s963_s5, %s706_s26  ;;  %s63_s23 = int_to_ptr.vmem [resolvable:$true] %s62_s23 }
  0x37   :  { %p710_p11 = scmp.lt.u32.totalorder %s706_s26, %s963_s5 }
  0x39   :  { %p712_p12 = pnand %p710_p11, %p707_p10 }
  0x3b   :  { %715 = shalt.err (!%p712_p12)
}
  0x3c   :  { %s716_s28 = scalar_lea.vmem %s63_s23, 2048  ;;  %p721_p0 = scmp.lt.s32.totalorder %s63_s23, %s63_s23 }
  0x3d   :  { %p717_p13 = scmp.ne.s32.totalorder %s63_s23, %s716_s28  ;;  %p722_p1 = scmp.lt.s32.totalorder %s716_s28, %s716_s28 }
  0x3f   :  { %p723_p2 = por %p722_p1, %p721_p0 }
  0x41   :  { %p724_p3 = pnand %p723_p2, %p717_p13 }
  0x43   :  { %727 = shalt.err (!%p724_p3)
}
  0x44   :  { %68 = dma.hbm_to_vmem [thread:$0]  %s963_s5, 2048, %s63_s23, [#allocation9], %s783_s15, %s783_s15, %s784_s16  }
  0x45   :  { %772 = dma.done.wait [#allocation3], 128  }
  0x46   :  { %773 = vsyncadd [#allocation3], 4294967168 }
  0x47   :  { %774 = dma.done.wait [#allocation6], 4096  }
  0x48   :  { %775 = vsyncadd [#allocation6], 4294963200 }
  0x49   :  { %776 = dma.done.wait [#allocation9], 2048  }
  0x4a   :  { %777 = vsyncadd [#allocation9], 4294965248  ;;  %v788_v0 = vmov 0.0|0.0   ;;  %vm789_vm0 = vmmov 0   ;;  %v790_v1 = vmov 0.0   ;;  %v84_v2 = vld [vmem:[#allocation5] sm:$0xff] }
  0x4b   :  { %557 = vmatprep.subr.bf16.mxu0 %v788_v0  ;;  %484 = vmatprep.mubr.msk.f32.mxu0 %vm789_vm0, %v790_v1  ;;  %v85_v3 = vld [vmem:[#allocation5 + $0x8] sm:$0xff]  ;;  %v86_v4 = vld [vmem:[#allocation5 + $0x10] sm:$0xff]  ;;  %v87_v6 = vld [vmem:[#allocation5 + $0x18] sm:$0xff] }
  0x4c   :  { %581 = vmatprep.subr.bf16.mxu1 %v788_v0  ;;  %519 = vmatprep.mubr.msk.f32.mxu1 %vm789_vm0, %v790_v1  ;;  %v558_v5 = vpack.c.bf16 %v85_v3, %v84_v2  ;;  %v561_v7 = vpack.c.bf16 %v87_v6, %v86_v4  ;;  %v88_v8 = vld [vmem:[#allocation5 + $0x20] sm:$0xff]  ;;  %v89_v9 = vld [vmem:[#allocation5 + $0x28] sm:$0xff]  ;;  %v180_v12 = vld [vmem:[#allocation7 + $0x10] sm:$0xff] }
  0x4d   :  { %v178_v10 = vld [vmem:[#allocation7] sm:$0xff]  ;;  %v179_v11 = vld [vmem:[#allocation7 + $0x8] sm:$0xff]  ;;  %v181_v13 = vld [vmem:[#allocation7 + $0x18] sm:$0xff]  ;;  %v564_v14 = vpack.c.bf16 %v89_v9, %v88_v8 }
  0x4e   :  { %559 = vmatpush3.bf16.msra.mxu0 %v558_v5  ;;  %v582_v15 = vpack.c.bf16 %v179_v11, %v178_v10  ;;  %v90_v16 = vld [vmem:[#allocation5 + $0x30] sm:$0xff]  ;;  %v91_v17 = vld [vmem:[#allocation5 + $0x38] sm:$0xff]  ;;  %v585_v18 = vpack.c.bf16 %v181_v13, %v180_v12  ;;  %v182_v19 = vld [vmem:[#allocation7 + $0x20] sm:$0xff] }
  0x4f   :  { %560 = vmatprep.subr.bf16.mxu0 %v788_v0  ;;  %v183_v20 = vld [vmem:[#allocation7 + $0x28] sm:$0xff]  ;;  %v567_v21 = vpack.c.bf16 %v91_v17, %v90_v16  ;;  %v92_v22 = vld [vmem:[#allocation5 + $0x40] sm:$0xff]  ;;  %v184_v25 = vld [vmem:[#allocation7 + $0x30] sm:$0xff] }
  0x50   :  { %583 = vmatpush3.bf16.msra.mxu1 %v582_v15  ;;  %v93_v23 = vld [vmem:[#allocation5 + $0x48] sm:$0xff]  ;;  %v588_v24 = vpack.c.bf16 %v183_v20, %v182_v19  ;;  %v185_v26 = vld [vmem:[#allocation7 + $0x38] sm:$0xff]  ;;  %v94_v28 = vld [vmem:[#allocation5 + $0x50] sm:$0xff] }
  0x51   :  { %584 = vmatprep.subr.bf16.mxu1 %v788_v0  ;;  %v570_v27 = vpack.c.bf16 %v93_v23, %v92_v22  ;;  %v95_v29 = vld [vmem:[#allocation5 + $0x58] sm:$0xff]  ;;  %v591_v30 = vpack.c.bf16 %v185_v26, %v184_v25  ;;  %v186_v31 = vld [vmem:[#allocation7 + $0x40] sm:$0xff]  ;;  %v187_v32 = vld [vmem:[#allocation7 + $0x48] sm:$0xff] }
  0x52   :  { %562 = vmatpush3.bf16.msra.mxu0 %v561_v7  ;;  %v573_v33 = vpack.c.bf16 %v95_v29, %v94_v28  ;;  %v96_v34 = vld [vmem:[#allocation5 + $0x60] sm:$0xff]  ;;  %v97_v35 = vld [vmem:[#allocation5 + $0x68] sm:$0xff]  ;;  %v594_v36 = vpack.c.bf16 %v187_v32, %v186_v31  ;;  %v188_v37 = vld [vmem:[#allocation7 + $0x50] sm:$0xff] }
  0x53   :  { %563 = vmatprep.subr.bf16.mxu0 %v788_v0  ;;  %v189_v38 = vld [vmem:[#allocation7 + $0x58] sm:$0xff]  ;;  %v576_v39 = vpack.c.bf16 %v97_v35, %v96_v34  ;;  %v98_v40 = vld [vmem:[#allocation5 + $0x70] sm:$0xff]  ;;  %v190_v43 = vld [vmem:[#allocation7 + $0x60] sm:$0xff] }
  0x54   :  { %586 = vmatpush3.bf16.msra.mxu1 %v585_v18  ;;  %v99_v41 = vld [vmem:[#allocation5 + $0x78] sm:$0xff]  ;;  %v597_v42 = vpack.c.bf16 %v189_v38, %v188_v37  ;;  %v191_v44 = vld [vmem:[#allocation7 + $0x68] sm:$0xff]  ;;  %v192_v48 = vld [vmem:[#allocation7 + $0x70] sm:$0xff] }
  0x55   :  { %587 = vmatprep.subr.bf16.mxu1 %v788_v0  ;;  %v579_v45 = vpack.c.bf16 %v99_v41, %v98_v40  ;;  %v600_v46 = vpack.c.bf16 %v191_v44, %v190_v43  ;;  %v83_v47 = vld [vmem:[#allocation2] sm:$0xff]  ;;  %v273_v51 = vld [vmem:[#allocation8] sm:$0xff]  ;;  %v274_v52 = vld [vmem:[#allocation8 + $0x8] sm:$0xff] }
  0x56   :  { %565 = vmatpush3.bf16.msra.mxu0 %v564_v14  ;;  %v193_v49 = vld [vmem:[#allocation7 + $0x78] sm:$0xff]  ;;  %v275_v53 = vld [vmem:[#allocation8 + $0x10] sm:$0xff]  ;;  %v606_v54 = vpack.c.bf16 %v274_v52, %v273_v51  ;;  %v277_v57 = vld [vmem:[#allocation8 + $0x20] sm:$0xff] }
  0x57   :  { %566 = vmatprep.subr.bf16.mxu0 %v788_v0  ;;  %v603_v50 = vpack.c.bf16 %v193_v49, %v192_v48  ;;  %v276_v55 = vld [vmem:[#allocation8 + $0x18] sm:$0xff]  ;;  %v278_v58 = vld [vmem:[#allocation8 + $0x28] sm:$0xff]  ;;  %v279_v60 = vld [vmem:[#allocation8 + $0x30] sm:$0xff] }
  0x58   :  { %589 = vmatpush3.bf16.msra.mxu1 %v588_v24  ;;  %v609_v56 = vpack.c.bf16 %v276_v55, %v275_v53  ;;  %v612_v59 = vpack.c.bf16 %v278_v58, %v277_v57  ;;  %v280_v61 = vld [vmem:[#allocation8 + $0x38] sm:$0xff]  ;;  %v281_v63 = vld [vmem:[#allocation8 + $0x40] sm:$0xff]  ;;  %v283_v3 = vld [vmem:[#allocation8 + $0x50] sm:$0xff] }
  0x59   :  { %590 = vmatprep.subr.bf16.mxu1 %v788_v0  ;;  %v615_v62 = vpack.c.bf16 %v280_v61, %v279_v60  ;;  %v284_v4 = vld [vmem:[#allocation8 + $0x58] sm:$0xff]  ;;  %v285_v6 = vld [vmem:[#allocation8 + $0x60] sm:$0xff]  ;;  %v286_v7 = vld [vmem:[#allocation8 + $0x68] sm:$0xff] }
  0x5a   :  { %568 = vmatpush3.bf16.msra.mxu0 %v567_v21  ;;  %v621_v5 = vpack.c.bf16 %v284_v4, %v283_v3  ;;  %v624_v8 = vpack.c.bf16 %v286_v7, %v285_v6  ;;  %v398_v9 = vld [vmem:[%s960_s2] ss:$0 sm:$0xff]  ;;  %v287_v14 = vld [vmem:[#allocation8 + $0x70] sm:$0xff]  ;;  %s791_s2 = smov [#allocation10]  }
  0x5b   :  { %569 = vmatprep.subr.bf16.mxu0 %v788_v0  ;;  %v288_v15 = vld [vmem:[#allocation8 + $0x78] sm:$0xff]  ;;  %s373_s10 = sshll.u32 %s791_s2, 4  ;;  %s374_s10 = int_to_ptr.vmem [resolvable:$true] %s373_s10 }
  0x5c   :  { %592 = vmatpush3.bf16.msra.mxu1 %v591_v30  ;;  %v627_v16 = vpack.c.bf16 %v288_v15, %v287_v14  ;;  %v399_v17 = vld [vmem:[%s962_s4] ss:$0 sm:$0xff]  ;;  %s728_s11 = scalar_lea.vmem %s374_s10, 128  ;;  %p733_p5 = scmp.lt.s32.totalorder %s374_s10, %s374_s10 }
  0x5d   :  { %593 = vmatprep.subr.bf16.mxu1 %v788_v0  ;;  %p729_p4 = scmp.ne.s32.totalorder %s374_s10, %s728_s11  ;;  %p734_p6 = scmp.lt.s32.totalorder %s728_s11, %s728_s11 }
  0x5e   :  { %571 = vmatpush3.bf16.msra.mxu0 %v570_v27 }
  0x5f   :  { %572 = vmatprep.subr.bf16.mxu0 %v788_v0  ;;  %p735_p7 = por %p734_p6, %p733_p5 }
  0x60   :  { %595 = vmatpush3.bf16.msra.mxu1 %v594_v36 }
  0x61   :  { %596 = vmatprep.subr.bf16.mxu1 %v788_v0  ;;  %p736_p8 = pnand %p735_p7, %p729_p4 }
  0x62   :  { %574 = vmatpush3.bf16.msra.mxu0 %v573_v33 }
  0x63   :  { %575 = vmatprep.subr.bf16.mxu0 %v788_v0 }
  0x64   :  { %598 = vmatpush3.bf16.msra.mxu1 %v597_v42 }
  0x65   :  { %599 = vmatprep.subr.bf16.mxu1 %v788_v0 }
  0x66   :  { %577 = vmatpush3.bf16.msra.mxu0 %v576_v39 }
  0x67   :  { %578 = vmatprep.subr.bf16.mxu0 %v788_v0 }
  0x68   :  { %601 = vmatpush3.bf16.msra.mxu1 %v600_v46 }
  0x69   :  { %602 = vmatprep.subr.bf16.mxu1 %v788_v0 }
  0x6a   :  { %580 = vmatpush3.bf16.msra.mxu0 %v579_v45 }
  0x6b   :  { %605 = vmatprep.subr.bf16.mxu0 %v788_v0 }
  0x6c   :  { %604 = vmatpush3.bf16.msra.mxu1 %v603_v50 }
  0x6d   :  { %485 = vmatmul.mubr.f32.vlgmr.msra.gmra.mrb[0].mxu0 %v83_v47 }
  0x6e   :  { %554 = vmatprep.mubr.msk.f32.mxu0 %vm789_vm0, %v790_v1  ;;  %607 = vmatpush3.bf16.msra.mxu0 %v606_v54  ;;  %v282_v1 = vld [vmem:[#allocation8 + $0x48] sm:$0xff] }
  0x6f   :  { %608 = vmatprep.subr.bf16.mxu0 %v788_v0  ;;  %v618_v2 = vpack.c.bf16 %v282_v1, %v281_v63 }
  0x72   :  { %610 = vmatpush3.bf16.msra.mxu0 %v609_v56 }
  0x73   :  { %611 = vmatprep.subr.bf16.mxu0 %v788_v0 }
  0x76   :  { %613 = vmatpush3.bf16.msra.mxu0 %v612_v59 }
  0x77   :  { %614 = vmatprep.subr.bf16.mxu0 %v788_v0 }
  0x7a   :  { %616 = vmatpush3.bf16.msra.mxu0 %v615_v62 }
  0x7b   :  { %617 = vmatprep.subr.bf16.mxu0 %v788_v0 }
  0x7e   :  { %619 = vmatpush3.bf16.msra.mxu0 %v618_v2 }
  0x7f   :  { %620 = vmatprep.subr.bf16.mxu0 %v788_v0 }
  0x82   :  { %622 = vmatpush3.bf16.msra.mxu0 %v621_v5 }
  0x83   :  { %623 = vmatprep.subr.bf16.mxu0 %v788_v0 }
  0x86   :  { %625 = vmatpush3.bf16.msra.mxu0 %v624_v8 }
  0x87   :  { %626 = vmatprep.subr.bf16.mxu0 %v788_v0 }
  0x8a   :  { %628 = vmatpush3.bf16.msra.mxu0 %v627_v16 }
 0x140   :  { %v173_v10 = vpop.f32.mrb[0].mxu0 }
 0x141   :  { %v174_v11 = vadd.f32 %v398_v9, %v173_v10  ;;  %v486_v12 = vpop.f32.mrb[1].mxu0 }
 0x143   :  { %v177_v13 = vmax.f32 %v174_v11, 0.0 }
 0x145   :  { %520 = vmatmul.mubr.f32.vlgmr.msra.gmra.mrb[0].mxu1 %v177_v13 }
 0x218   :  { %v267_v18 = vpop.f32.mrb[0].mxu1 }
 0x219   :  { %v268_v19 = vadd.f32 %v399_v17, %v267_v18  ;;  %v521_v0 = vpop.f32.mrb[1].mxu1 }
 0x21b   :  { %v271_v20 = vmax.f32 %v268_v19, 0.0 }
 0x21d   :  { %272 = vst [vmem:[#allocation10] sm:$0xff] %v271_v20  ;;  %555 = vmatmul.mubr.f32.vlgmr.msra.gmra.mrb[2].mxu0 %v271_v20 }
 0x21e   :  { %739 = shalt.err (!%p736_p8)
}
 0x21f   :  { %s740_s4 = scalar_lea.hbm %s965_s7, 128 }
 0x220   :  { %p741_p9 = scmp.ne.s32.totalorder %s965_s7, %s740_s4  ;;  %p744_p10 = scmp.lt.u32.totalorder %s740_s4, %s965_s7 }
 0x222   :  { %p746_p11 = pnand %p744_p10, %p741_p9 }
 0x224   :  { %749 = shalt.err (!%p746_p11)
}
 0x225   :  { %376 = dma.vmem_to_hbm [thread:$0]  %s374_s10, 128, %s965_s7, [#allocation4]   ;;  %v400_v21 = vld [vmem:[%s964_s6] ss:$0 sm:$0xff] }
 0x226   :  { %s792_s24 = smov [#allocation11]  }
 0x227   :  { %s383_s25 = sshll.u32 %s792_s24, 4  ;;  %s384_s25 = int_to_ptr.vmem [resolvable:$true] %s383_s25 }
 0x228   :  { %s750_s26 = scalar_lea.vmem %s384_s25, 128  ;;  %p755_p13 = scmp.lt.s32.totalorder %s384_s25, %s384_s25 }
 0x229   :  { %p751_p12 = scmp.ne.s32.totalorder %s384_s25, %s750_s26  ;;  %p756_p0 = scmp.lt.s32.totalorder %s750_s26, %s750_s26 }
 0x22b   :  { %p757_p1 = por %p756_p0, %p755_p13 }
 0x22d   :  { %p758_p2 = pnand %p757_p1, %p751_p12 }
 0x2f0   :  { %v362_v22 = vpop.f32.mrb[2].mxu0 }
 0x2f1   :  { %v363_v23 = vadd.f32 %v400_v21, %v362_v22  ;;  %v556_v24 = vpop.f32.mrb[3].mxu0 }
 0x2f3   :  { %366 = vst [vmem:[#allocation11] sm:$0xff] %v363_v23 }
 0x2f4   :  { %761 = shalt.err (!%p758_p2)
}
 0x2f5   :  { %s762_s29 = scalar_lea.hbm %s966_s8, 128 }
 0x2f6   :  { %p763_p3 = scmp.ne.s32.totalorder %s966_s8, %s762_s29  ;;  %p766_p4 = scmp.lt.u32.totalorder %s762_s29, %s966_s8 }
 0x2f8   :  { %p768_p5 = pnand %p766_p4, %p763_p3 }
 0x2fa   :  { %771 = shalt.err (!%p768_p5)
}
 0x2fb   :  { %386 = dma.vmem_to_hbm [thread:$0]  %s384_s25, 128, %s966_s8, [#allocation12]  }
 0x2fc   :  { %778 = dma.done.wait [#allocation4], 128  }
 0x2fd   :  { %779 = vsyncadd [#allocation4], 4294967168 }
 0x2fe   :  { %780 = dma.done.wait [#allocation12], 128  }
 0x2ff   :  { %781 = vsyncadd [#allocation12], 4294967168 }
 0x300   :  { %393 = vsyncpa [#allocation3], 1 }
 0x301   :  { %394 = vsyncpa [#allocation6], 1 }
 0x302   :  { %395 = vsyncpa [#allocation9], 1 }
 0x303   :  { %396 = vsyncpa [#allocation4], 1 }
 0x304   :  { %397 = vsyncpa [#allocation12], 1 }

</bundles_post_ra>
